<compile_context>
chip_gen: v5e
topology: v5e:2x2
jax: 0.10.0
libtpu: 0.0.40
codegen_flags: <defaults>
</compile_context>

<pallas_src>
import functools

import jax
import jax.numpy as jnp
from jax import lax
from jax.experimental import pallas as pl
from jax.experimental.pallas import tpu as pltpu


def _round_up(x: int, m: int) -> int:
    return (x + m - 1) // m * m


def _mlp_multihead_kernel(
    x_ref,        # (TB, IN)        f32
    w1_ref,       # (IN, H)         bf16
    b1_ref,       # (1, H)          f32
    w2_ref,       # (H, K*H)        bf16  (heads concatenated along lanes)
    b2_ref,       # (1, K*H)        f32
    w3_ref,       # (K*H, K*H)      bf16  (block-diagonal)
    b3_ref,       # (1, K*H)        f32
    w4_ref,       # (K*H, Wpad)     bf16  (block-diagonal, zero-padded lanes)
    b4_ref,       # (1, Wpad)       f32
    segmask_ref,  # (Wpad, Wpad)    f32   softmax segment mask
    out_ref,      # (TB, Wpad)      f32   lane-dense output slab
    *,
    valid_width: int,
    use_softmax: bool,
):
    cdt = w1_ref.dtype  # MXU compute dtype (bf16 by default)

    # Shared trunk: h = relu(x @ W1 + b1). Dropout == identity (eval).
    h = jnp.dot(x_ref[...].astype(cdt), w1_ref[...],
                preferred_element_type=jnp.float32) + b1_ref[...]
    h = jnp.maximum(h, 0.0)

    # All heads at once via packed / block-diagonal weights.
    h2 = jnp.dot(h.astype(cdt), w2_ref[...],
                 preferred_element_type=jnp.float32) + b2_ref[...]
    h2 = jnp.maximum(h2, 0.0)

    h3 = jnp.dot(h2.astype(cdt), w3_ref[...],
                 preferred_element_type=jnp.float32) + b3_ref[...]
    h3 = jnp.maximum(h3, 0.0)

    logits = jnp.dot(h3.astype(cdt), w4_ref[...],
                     preferred_element_type=jnp.float32) + b4_ref[...]

    if use_softmax:
        lane = lax.broadcasted_iota(jnp.int32, logits.shape, 1)
        valid = lane < valid_width
        # A per-row constant cancels in every per-head softmax segment, so the
        # global row max over valid lanes is a legal stabilizer (avoids K
        # sub-vreg slices + concat through the XLU).
        gmax = jnp.max(jnp.where(valid, logits, -jnp.inf), axis=-1, keepdims=True)
        e = jnp.where(valid, jnp.exp(logits - gmax), 0.0)
        # Per-head denominator broadcast back to every lane in one MXU pass.
        denom = jnp.dot(e, segmask_ref[...], preferred_element_type=jnp.float32)
        denom = jnp.where(valid, denom, 1.0)
        result = e * pl.reciprocal(denom, approx=True)
    else:
        result = logits

    out_ref[...] = result.astype(out_ref.dtype)


def _block_diag(w):
    """(K, I, O) per-head weights -> (K*I, K*O) block-diagonal matrix."""
    K, I, O = w.shape
    zeros = jnp.zeros((I, O), w.dtype)
    rows = []
    for k in range(K):
        rows.append(jnp.concatenate([w[k] if j == k else zeros for j in range(K)],
                                    axis=1))
    return jnp.concatenate(rows, axis=0)


def prepack_params(params, compute_dtype=jnp.bfloat16):
    """One-time packing of the per-head Linear weights for the fused kernel.

    params (PyTorch Linear shapes pre-transposed to (in, out)):
      w1 (IN, H), b1 (1, H),
      w2/w3 (K, H, H), b2/b3 (K, 1, H),
      w4 (K, H, OUT), b4 (K, 1, OUT).
    """
    IN, H = params["w1"].shape
    K = params["w2"].shape[0]
    OUT = params["w4"].shape[-1]
    Wpad = max(128, _round_up(K * OUT, 128))  # lane-dense output width

    # TODO(synk): for K*H > one MXU tile (256), switch w3/w4 to per-head
    # contractions instead of block-diagonal packing (K-fold zero FLOPs/bytes).
    w2p = jnp.transpose(params["w2"], (1, 0, 2)).reshape(H, K * H)
    w3p = _block_diag(params["w3"])
    w4p = jnp.pad(_block_diag(params["w4"]), ((0, 0), (0, Wpad - K * OUT)))
    b4p = jnp.pad(params["b4"].reshape(1, K * OUT), ((0, 0), (0, Wpad - K * OUT)))

    # Softmax segment mask: M[i, j] = 1 iff lanes i, j are valid and belong to
    # the same head. denom = e @ M gives each lane its own head's sum.
    lane = jnp.arange(Wpad)
    seg = lane // OUT
    valid = lane < K * OUT
    segmask = ((seg[:, None] == seg[None, :])
               & valid[:, None] & valid[None, :]).astype(jnp.float32)

    return {
        "w1": params["w1"].astype(compute_dtype),
        "b1": params["b1"].astype(jnp.float32),
        "w2": w2p.astype(compute_dtype),
        "b2": params["b2"].reshape(1, K * H).astype(jnp.float32),
        "w3": w3p.astype(compute_dtype),
        "b3": params["b3"].reshape(1, K * H).astype(jnp.float32),
        "w4": w4p.astype(compute_dtype),
        "b4": b4p.astype(jnp.float32),
        "segmask": segmask,
        "num_heads": K,
        "out_len": OUT,
        "hidden": H,
    }


def mlp_multihead_forward(x, packed, *, use_softmax: bool = True,
                          batch_block: int = 256):
    """Fused multi-head MLP forward.

    Args:
      x: (batch, input_len) float32.
      packed: output of prepack_params (call once at init, reuse every call).
    Returns:
      (K, batch, OUT) float32 — matches torch.stack(list_out).
    """
    B, IN = x.shape
    K = packed["num_heads"]
    OUT = packed["out_len"]
    H = packed["hidden"]
    Wpad = packed["w4"].shape[-1]
    valid_width = K * OUT

    # Batch tiling: big blocks (multiple of 16 for bf16 sublanes), weights
    # stay resident across the grid; "parallel" axis shards across TCs (v7x).
    tb = min(batch_block, _round_up(B, 16))
    B_pad = _round_up(B, tb)
    x_p = x if B_pad == B else jnp.pad(x, ((0, B_pad - B), (0, 0)))
    grid = (B_pad // tb,)

    const2 = lambda i: (0, 0)
    packed_arrays = [packed[k] for k in
                     ("w1", "b1", "w2", "b2", "w3", "b3", "w4", "b4", "segmask")]
    in_specs = [pl.BlockSpec((tb, IN), lambda i: (i, 0))]
    in_specs += [pl.BlockSpec(a.shape, const2) for a in packed_arrays]
    out_specs = pl.BlockSpec((tb, Wpad), lambda i: (i, 0))

    # VMEM budget: resident packed params + double-buffered x/out tiles + f32
    # activation temporaries (capped so it also fits v7x's 64 MiB).
    resident = sum(int(a.size) * a.dtype.itemsize for a in packed_arrays)
    tiles = 2 * tb * (IN + Wpad) * 4
    temps = 8 * tb * max(H, K * H, Wpad) * 4
    vmem_limit = int(min(64 * 2**20,
                         max(16 * 2**20, resident + tiles + temps + 4 * 2**20)))

    flops = 2 * B_pad * (IN * H + H * K * H + (K * H) ** 2 + K * H * Wpad)
    if use_softmax:
        flops += 2 * B_pad * Wpad * Wpad
    cost = pl.CostEstimate(
        flops=int(flops),
        transcendentals=int(B_pad * Wpad) if use_softmax else 0,
        bytes_accessed=int(x_p.size * 4 + resident + B_pad * Wpad * 4),
    )

    kernel = functools.partial(_mlp_multihead_kernel,
                               valid_width=valid_width, use_softmax=use_softmax)

    out = pl.pallas_call(
        kernel,
        out_shape=jax.ShapeDtypeStruct((B_pad, Wpad), jnp.float32),
        grid=grid,
        in_specs=in_specs,
        out_specs=out_specs,
        compiler_params=pltpu.CompilerParams(
            dimension_semantics=("parallel",),
            vmem_limit_bytes=vmem_limit),
        cost_estimate=cost,
    )(x_p, *packed_arrays)

    # Lane-dense slab (B_pad, Wpad) -> (K, B, OUT) to match torch.stack.
    out = out[:B, :valid_width].reshape(B, K, OUT)
    return jnp.transpose(out, (1, 0, 2))


def init_params(key, input_len, output_len, output_num, num_neuron):
    """Deterministic synthetic parameters (PyTorch Linear shapes, pre-transposed
    so the forward computes x @ W + b)."""
    ks = jax.random.split(key, 8)
    scale = 0.1
    return {
        "w1": scale * jax.random.normal(ks[0], (input_len, num_neuron), jnp.float32),
        "b1": scale * jax.random.normal(ks[1], (1, num_neuron), jnp.float32),
        "w2": scale * jax.random.normal(ks[2], (output_num, num_neuron, num_neuron), jnp.float32),
        "b2": scale * jax.random.normal(ks[3], (output_num, 1, num_neuron), jnp.float32),
        "w3": scale * jax.random.normal(ks[4], (output_num, num_neuron, num_neuron), jnp.float32),
        "b3": scale * jax.random.normal(ks[5], (output_num, 1, num_neuron), jnp.float32),
        "w4": scale * jax.random.normal(ks[6], (output_num, num_neuron, output_len), jnp.float32),
        "b4": scale * jax.random.normal(ks[7], (output_num, 1, output_len), jnp.float32),
    }


def reference_forward(x, params, use_softmax=True):
    """Pure-JAX f32 reference mirroring the PyTorch forward (dropout = identity)."""
    h = jnp.maximum(x @ params["w1"] + params["b1"], 0.0)
    outs = []
    K = params["w2"].shape[0]
    for i in range(K):
        h2 = jnp.maximum(h @ params["w2"][i] + params["b2"][i], 0.0)
        h3 = jnp.maximum(h2 @ params["w3"][i] + params["b3"][i], 0.0)
        logits = h3 @ params["w4"][i] + params["b4"][i]
        if use_softmax:
            logits = jax.nn.softmax(logits, axis=-1)
        outs.append(logits)
    return jnp.stack(outs)


if __name__ == "__main__":
    # Small shapes consistent with the module's forward.
    batch = 8
    input_len = 16
    num_neuron = 32
    output_len = 8
    output_num = 3

    key = jax.random.PRNGKey(0)
    kx, kp = jax.random.split(key)
    x = jax.random.normal(kx, (batch, input_len), jnp.float32)
    params = init_params(kp, input_len, output_len, output_num, num_neuron)

    # One-time packing (bf16 MXU operands); reused on every forward call.
    packed = prepack_params(params)

    out = mlp_multihead_forward(x, packed, use_softmax=True)
    out = jax.block_until_ready(out)
    ref = reference_forward(x, params, use_softmax=True)
    assert out.shape == (output_num, batch, output_len), out.shape
    # bf16 MXU operands + approx reciprocal => relaxed tolerance vs f32 reference.
    assert jnp.allclose(out, ref, atol=2e-2, rtol=2e-2), \
        float(jnp.max(jnp.abs(out - ref)))

    out2 = jax.block_until_ready(mlp_multihead_forward(x, packed, use_softmax=False))
    ref2 = reference_forward(x, params, use_softmax=False)
    assert jnp.allclose(out2, ref2, atol=2e-2, rtol=2e-2), \
        float(jnp.max(jnp.abs(out2 - ref2)))

    print("KERNEL_OK")
</pallas_src>

<mosaic_0001>
module attributes {stable_mosaic.version = 11 : i64} {
  func.func @_mlp_multihead_kernel(%arg0: i32, %arg1: memref<16x16xf32, #tpu.memory_space<vmem>>, %arg2: memref<16x32xbf16, #tpu.memory_space<vmem>>, %arg3: memref<1x32xf32, #tpu.memory_space<vmem>>, %arg4: memref<32x96xbf16, #tpu.memory_space<vmem>>, %arg5: memref<1x96xf32, #tpu.memory_space<vmem>>, %arg6: memref<96x96xbf16, #tpu.memory_space<vmem>>, %arg7: memref<1x96xf32, #tpu.memory_space<vmem>>, %arg8: memref<96x128xbf16, #tpu.memory_space<vmem>>, %arg9: memref<1x128xf32, #tpu.memory_space<vmem>>, %arg10: memref<128x128xf32, #tpu.memory_space<vmem>>, %arg11: memref<16x128xf32, #tpu.memory_space<vmem>>) attributes {dimension_semantics = [#tpu.dimension_semantics<parallel>], iteration_bounds = array<i64: 1>, scalar_prefetch = 0 : i64, scratch_operands = 0 : i64, tpu.core_type = #tpu.core_type<tc>, window_params = [{transform_indices = @transform_0, window_bounds = array<i64: 16, 16>}, {pipeline_mode = #tpu.pipeline_mode<synchronous>, transform_indices = @transform_1, window_bounds = array<i64: 16, 32>}, {pipeline_mode = #tpu.pipeline_mode<synchronous>, transform_indices = @transform_2, window_bounds = array<i64: 1, 32>}, {pipeline_mode = #tpu.pipeline_mode<synchronous>, transform_indices = @transform_3, window_bounds = array<i64: 32, 96>}, {pipeline_mode = #tpu.pipeline_mode<synchronous>, transform_indices = @transform_4, window_bounds = array<i64: 1, 96>}, {pipeline_mode = #tpu.pipeline_mode<synchronous>, transform_indices = @transform_5, window_bounds = array<i64: 96, 96>}, {pipeline_mode = #tpu.pipeline_mode<synchronous>, transform_indices = @transform_6, window_bounds = array<i64: 1, 96>}, {pipeline_mode = #tpu.pipeline_mode<synchronous>, transform_indices = @transform_7, window_bounds = array<i64: 96, 128>}, {pipeline_mode = #tpu.pipeline_mode<synchronous>, transform_indices = @transform_8, window_bounds = array<i64: 1, 128>}, {pipeline_mode = #tpu.pipeline_mode<synchronous>, transform_indices = @transform_9, window_bounds = array<i64: 128, 128>}, {transform_indices = @transform_10, window_bounds = array<i64: 16, 128>}]} {
    %c0 = arith.constant 0 : index
    %c0_0 = arith.constant 0 : index
    %0 = vector.load %arg1[%c0, %c0_0] : memref<16x16xf32, #tpu.memory_space<vmem>>, vector<16x16xf32>
    %1 = arith.truncf %0 : vector<16x16xf32> to vector<16x16xbf16>
    %c0_1 = arith.constant 0 : index
    %c0_2 = arith.constant 0 : index
    %2 = vector.load %arg2[%c0_1, %c0_2] : memref<16x32xbf16, #tpu.memory_space<vmem>>, vector<16x32xbf16>
    %cst = arith.constant dense<0.000000e+00> : vector<16x32xf32>
    %3 = tpu.matmul %1, %2, %cst {dimension_numbers = #tpu.dot_dimension_numbers<[1], [0], [0], [1], [0, 0, 1, 1], [], []>} : vector<16x16xbf16>, vector<16x32xbf16>, vector<16x32xf32> -> vector<16x32xf32>
    %c0_3 = arith.constant 0 : index
    %c0_4 = arith.constant 0 : index
    %4 = vector.load %arg3[%c0_3, %c0_4] : memref<1x32xf32, #tpu.memory_space<vmem>>, vector<1x32xf32>
    %5 = vector.broadcast %4 : vector<1x32xf32> to vector<16x32xf32>
    %6 = arith.addf %3, %5 : vector<16x32xf32>
    %cst_5 = arith.constant 0.000000e+00 : f32
    %7 = vector.broadcast %cst_5 : f32 to vector<16x32xf32>
    %8 = arith.maximumf %6, %7 : vector<16x32xf32>
    %9 = arith.truncf %8 : vector<16x32xf32> to vector<16x32xbf16>
    %c0_6 = arith.constant 0 : index
    %c0_7 = arith.constant 0 : index
    %10 = vector.load %arg4[%c0_6, %c0_7] : memref<32x96xbf16, #tpu.memory_space<vmem>>, vector<32x96xbf16>
    %cst_8 = arith.constant dense<0.000000e+00> : vector<16x96xf32>
    %11 = tpu.matmul %9, %10, %cst_8 {dimension_numbers = #tpu.dot_dimension_numbers<[1], [0], [0], [1], [0, 0, 1, 1], [], []>} : vector<16x32xbf16>, vector<32x96xbf16>, vector<16x96xf32> -> vector<16x96xf32>
    %c0_9 = arith.constant 0 : index
    %c0_10 = arith.constant 0 : index
    %12 = vector.load %arg5[%c0_9, %c0_10] : memref<1x96xf32, #tpu.memory_space<vmem>>, vector<1x96xf32>
    %13 = vector.broadcast %12 : vector<1x96xf32> to vector<16x96xf32>
    %14 = arith.addf %11, %13 : vector<16x96xf32>
    %cst_11 = arith.constant 0.000000e+00 : f32
    %15 = vector.broadcast %cst_11 : f32 to vector<16x96xf32>
    %16 = arith.maximumf %14, %15 : vector<16x96xf32>
    %17 = arith.truncf %16 : vector<16x96xf32> to vector<16x96xbf16>
    %c0_12 = arith.constant 0 : index
    %c0_13 = arith.constant 0 : index
    %18 = vector.load %arg6[%c0_12, %c0_13] : memref<96x96xbf16, #tpu.memory_space<vmem>>, vector<96x96xbf16>
    %cst_14 = arith.constant dense<0.000000e+00> : vector<16x96xf32>
    %19 = tpu.matmul %17, %18, %cst_14 {dimension_numbers = #tpu.dot_dimension_numbers<[1], [0], [0], [1], [0, 0, 1, 1], [], []>} : vector<16x96xbf16>, vector<96x96xbf16>, vector<16x96xf32> -> vector<16x96xf32>
    %c0_15 = arith.constant 0 : index
    %c0_16 = arith.constant 0 : index
    %20 = vector.load %arg7[%c0_15, %c0_16] : memref<1x96xf32, #tpu.memory_space<vmem>>, vector<1x96xf32>
    %21 = vector.broadcast %20 : vector<1x96xf32> to vector<16x96xf32>
    %22 = arith.addf %19, %21 : vector<16x96xf32>
    %cst_17 = arith.constant 0.000000e+00 : f32
    %23 = vector.broadcast %cst_17 : f32 to vector<16x96xf32>
    %24 = arith.maximumf %22, %23 : vector<16x96xf32>
    %25 = arith.truncf %24 : vector<16x96xf32> to vector<16x96xbf16>
    %c0_18 = arith.constant 0 : index
    %c0_19 = arith.constant 0 : index
    %26 = vector.load %arg8[%c0_18, %c0_19] : memref<96x128xbf16, #tpu.memory_space<vmem>>, vector<96x128xbf16>
    %cst_20 = arith.constant dense<0.000000e+00> : vector<16x128xf32>
    %27 = tpu.matmul %25, %26, %cst_20 {dimension_numbers = #tpu.dot_dimension_numbers<[1], [0], [0], [1], [0, 0, 1, 1], [], []>} : vector<16x96xbf16>, vector<96x128xbf16>, vector<16x128xf32> -> vector<16x128xf32>
    %c0_21 = arith.constant 0 : index
    %c0_22 = arith.constant 0 : index
    %28 = vector.load %arg9[%c0_21, %c0_22] : memref<1x128xf32, #tpu.memory_space<vmem>>, vector<1x128xf32>
    %29 = vector.broadcast %28 : vector<1x128xf32> to vector<16x128xf32>
    %30 = arith.addf %27, %29 : vector<16x128xf32>
    %31 = tpu.iota {dimensions = array<i32: 1>} : vector<16x128xi32>
    %c24_i32 = arith.constant 24 : i32
    %32 = vector.broadcast %c24_i32 : i32 to vector<16x128xi32>
    %33 = arith.cmpi slt, %31, %32 : vector<16x128xi32>
    %cst_23 = arith.constant 0xFF800000 : f32
    %34 = vector.broadcast %cst_23 : f32 to vector<16x128xf32>
    %35 = arith.select %33, %30, %34 : vector<16x128xi1>, vector<16x128xf32>
    %cst_24 = arith.constant dense<0xFF800000> : vector<16xf32>
    %36 = vector.multi_reduction <maximumf>, %35, %cst_24 [1] : vector<16x128xf32> to vector<16xf32>
    %37 = vector.shape_cast %36 : vector<16xf32> to vector<16x1xf32>
    %38 = vector.broadcast %37 : vector<16x1xf32> to vector<16x128xf32>
    %39 = arith.subf %30, %38 : vector<16x128xf32>
    %40 = math.exp %39 : vector<16x128xf32>
    %cst_25 = arith.constant 0.000000e+00 : f32
    %41 = vector.broadcast %cst_25 : f32 to vector<16x128xf32>
    %42 = arith.select %33, %40, %41 : vector<16x128xi1>, vector<16x128xf32>
    %c0_26 = arith.constant 0 : index
    %c0_27 = arith.constant 0 : index
    %43 = vector.load %arg10[%c0_26, %c0_27] : memref<128x128xf32, #tpu.memory_space<vmem>>, vector<128x128xf32>
    %cst_28 = arith.constant dense<0.000000e+00> : vector<16x128xf32>
    %44 = tpu.matmul %42, %43, %cst_28 {dimension_numbers = #tpu.dot_dimension_numbers<[1], [0], [0], [1], [0, 0, 1, 1], [], []>} : vector<16x128xf32>, vector<128x128xf32>, vector<16x128xf32> -> vector<16x128xf32>
    %cst_29 = arith.constant 1.000000e+00 : f32
    %45 = vector.broadcast %cst_29 : f32 to vector<16x128xf32>
    %46 = arith.select %33, %44, %45 : vector<16x128xi1>, vector<16x128xf32>
    %47 = tpu.reciprocal %46 {approx = true} : vector<16x128xf32> -> vector<16x128xf32>
    %48 = arith.mulf %42, %47 : vector<16x128xf32>
    %c0_30 = arith.constant 0 : index
    %c0_31 = arith.constant 0 : index
    %49 = vector.load %arg11[%c0_30, %c0_31] : memref<16x128xf32, #tpu.memory_space<vmem>>, vector<16x128xf32>
    tpu.vector_store %arg11[%c0_30, %c0_31], %48 {strides = array<i32>} : memref<16x128xf32, #tpu.memory_space<vmem>>, vector<16x128xf32>,
    return
  }
  func.func @transform_0(%arg0: i32) -> (i32, i32) {
    %c0_i32 = arith.constant 0 : i32
    %c0_i32_0 = arith.constant 0 : i32
    return %arg0, %c0_i32 : i32, i32
  }
  func.func @transform_1(%arg0: i32) -> (i32, i32) {
    %c0_i32 = arith.constant 0 : i32
    %c0_i32_0 = arith.constant 0 : i32
    %c0_i32_1 = arith.constant 0 : i32
    return %c0_i32, %c0_i32_0 : i32, i32
  }
  func.func @transform_2(%arg0: i32) -> (i32, i32) {
    %c0_i32 = arith.constant 0 : i32
    %c0_i32_0 = arith.constant 0 : i32
    %c0_i32_1 = arith.constant 0 : i32
    return %c0_i32, %c0_i32_0 : i32, i32
  }
  func.func @transform_3(%arg0: i32) -> (i32, i32) {
    %c0_i32 = arith.constant 0 : i32
    %c0_i32_0 = arith.constant 0 : i32
    %c0_i32_1 = arith.constant 0 : i32
    return %c0_i32, %c0_i32_0 : i32, i32
  }
  func.func @transform_4(%arg0: i32) -> (i32, i32) {
    %c0_i32 = arith.constant 0 : i32
    %c0_i32_0 = arith.constant 0 : i32
    %c0_i32_1 = arith.constant 0 : i32
    return %c0_i32, %c0_i32_0 : i32, i32
  }
  func.func @transform_5(%arg0: i32) -> (i32, i32) {
    %c0_i32 = arith.constant 0 : i32
    %c0_i32_0 = arith.constant 0 : i32
    %c0_i32_1 = arith.constant 0 : i32
    return %c0_i32, %c0_i32_0 : i32, i32
  }
  func.func @transform_6(%arg0: i32) -> (i32, i32) {
    %c0_i32 = arith.constant 0 : i32
    %c0_i32_0 = arith.constant 0 : i32
    %c0_i32_1 = arith.constant 0 : i32
    return %c0_i32, %c0_i32_0 : i32, i32
  }
  func.func @transform_7(%arg0: i32) -> (i32, i32) {
    %c0_i32 = arith.constant 0 : i32
    %c0_i32_0 = arith.constant 0 : i32
    %c0_i32_1 = arith.constant 0 : i32
    return %c0_i32, %c0_i32_0 : i32, i32
  }
  func.func @transform_8(%arg0: i32) -> (i32, i32) {
    %c0_i32 = arith.constant 0 : i32
    %c0_i32_0 = arith.constant 0 : i32
    %c0_i32_1 = arith.constant 0 : i32
    return %c0_i32, %c0_i32_0 : i32, i32
  }
  func.func @transform_9(%arg0: i32) -> (i32, i32) {
    %c0_i32 = arith.constant 0 : i32
    %c0_i32_0 = arith.constant 0 : i32
    %c0_i32_1 = arith.constant 0 : i32
    return %c0_i32, %c0_i32_0 : i32, i32
  }
  func.func @transform_10(%arg0: i32) -> (i32, i32) {
    %c0_i32 = arith.constant 0 : i32
    %c0_i32_0 = arith.constant 0 : i32
    return %arg0, %c0_i32 : i32, i32
  }
}

</mosaic_0001>

<bundles_post_ra>
// kernel: tpu_custom_call.1
= control target key start
LH: loop header
LB: loop body
LE: loop exit
PB: predicated region body
PF: predicated region fallthrough
CT: control target
= control target key end

     0   :  { %15 = vsyncpa [#allocation3], 0  ;;  %s848_s0 = inlined_call_operand.hbm [shape: f32[16,16], index: 0, kind: input, shape index: {}]   ;;  %s849_s1 = inlined_call_operand.hbm [shape: bf16[16,32], index: 1, kind: input, shape index: {}]   ;;  %s850_s2 = inlined_call_operand.vmem [shape: f32[1,32], index: 2, kind: input, shape index: {}]   ;;  %s851_s3 = inlined_call_operand.hbm [shape: bf16[32,96], index: 3, kind: input, shape index: {}]   ;;  %s852_s4 = inlined_call_operand.vmem [shape: f32[1,96], index: 4, kind: input, shape index: {}]   ;;  %s853_s5 = inlined_call_operand.hbm [shape: bf16[96,96], index: 5, kind: input, shape index: {}]   ;;  %s854_s6 = inlined_call_operand.vmem [shape: f32[1,96], index: 6, kind: input, shape index: {}]   ;;  %s855_s7 = inlined_call_operand.hbm [shape: bf16[96,128], index: 7, kind: input, shape index: {}]   ;;  %s856_s8 = inlined_call_operand.vmem [shape: f32[1,128], index: 8, kind: input, shape index: {}]   ;;  %s857_s9 = inlined_call_operand.hbm [shape: f32[128,128], index: 9, kind: input, shape index: {}]   ;;  %s858_s10 = inlined_call_operand.hbm [shape: f32[16,128], index: 10, kind: output, shape index: {}]  }
   0x1   :  { %16 = vsyncpa [#allocation6], 0 }
   0x2   :  { %17 = vsyncpa [#allocation9], 0 }
   0x3   :  { %18 = vsyncpa [#allocation12], 0  ;;  %s37_s15 = sshll.u32 %s849_s1, 4  ;;  %s38_s15 = int_to_ptr.hbm [resolvable:$true] %s37_s15 }
   0x4   :  { %19 = vsyncpa [#allocation4], 0  ;;  %s718_s16 = smov [#allocation5]   ;;  %s67_s20 = sshll.u32 %s853_s5, 4  ;;  %s68_s20 = int_to_ptr.hbm [resolvable:$true] %s67_s20 }
   0x5   :  { %s39_s17 = sshll.u32 %s718_s16, 4  ;;  %s719_s21 = smov 64   ;;  %s40_s17 = int_to_ptr.vmem [resolvable:$true] %s39_s17 }
   0x6   :  { %s720_s22 = smov 4   ;;  %s721_s23 = smov [#allocation8]  }
   0x7   :  { %45 = dma.hbm_to_vmem [thread:$0]  %s38_s15, 128, %s40_s17, [#allocation6], %s719_s21, %s719_s21, %s720_s22  }
   0x8   :  { %s69_s24 = sshll.u32 %s721_s23, 4  ;;  %s24_s26 = sshll.u32 %s848_s0, 4  ;;  %s70_s24 = int_to_ptr.vmem [resolvable:$true] %s69_s24  ;;  %s25_s26 = int_to_ptr.hbm [resolvable:$true] %s24_s26 }
   0x9   :  { %75 = dma.hbm_to_vmem [thread:$0]  %s68_s20, 768, %s70_s24, [#allocation9], %s719_s21, %s719_s21, %s720_s22  }
   0xa   :  { %s722_s5 = smov [#allocation2]   ;;  %s52_s30 = sshll.u32 %s851_s3, 4  ;;  %s53_s30 = int_to_ptr.hbm [resolvable:$true] %s52_s30 }
   0xb   :  { %s26_s27 = sshll.u32 %s722_s5, 4  ;;  %s723_s11 = smov 128   ;;  %s27_s27 = int_to_ptr.vmem [resolvable:$true] %s26_s27 }
   0xc   :  { %s724_s12 = smov 8   ;;  %s725_s0 = smov [#allocation7]  }
   0xd   :  { %32 = dma.hbm_to_vmem [thread:$0]  %s25_s26, 256, %s27_s27, [#allocation3], %s723_s11, %s723_s11, %s724_s12  }
   0xe   :  { %s54_s13 = sshll.u32 %s725_s0, 4  ;;  %s82_s16 = sshll.u32 %s855_s7, 4  ;;  %s55_s13 = int_to_ptr.vmem [resolvable:$true] %s54_s13  ;;  %s83_s16 = int_to_ptr.hbm [resolvable:$true] %s82_s16 }
   0xf   :  { %60 = dma.hbm_to_vmem [thread:$0]  %s53_s30, 256, %s55_s13, [#allocation6], %s719_s21, %s719_s21, %s720_s22  }
  0x10   :  { %s97_s18 = sshll.u32 %s857_s9, 4  ;;  %s726_s19 = smov [#allocation10]   ;;  %s98_s18 = int_to_ptr.hbm [resolvable:$true] %s97_s18 }
  0x11   :  { %s84_s20 = sshll.u32 %s726_s19, 4  ;;  %s727_s23 = smov [#allocation11]   ;;  %s85_s20 = int_to_ptr.vmem [resolvable:$true] %s84_s20 }
  0x12   :  { %90 = dma.hbm_to_vmem [thread:$0]  %s83_s16, 768, %s85_s20, [#allocation9], %s719_s21, %s719_s21, %s720_s22  }
  0x13   :  { %s99_s7 = sshll.u32 %s727_s23, 4  ;;  %s100_s7 = int_to_ptr.vmem [resolvable:$true] %s99_s7 }
  0x14   :  { %105 = dma.hbm_to_vmem [thread:$0]  %s98_s18, 2048, %s100_s7, [#allocation12], %s723_s11, %s723_s11, %s724_s12  }
  0x15   :  { %708 = dma.done.wait [#allocation3], 256  }
  0x16   :  { %709 = vsyncadd [#allocation3], 4294967040 }
  0x17   :  { %710 = dma.done.wait [#allocation6], 384  }
  0x18   :  { %711 = vsyncadd [#allocation6], 4294966912 }
  0x19   :  { %712 = dma.done.wait [#allocation9], 1536  }
  0x1a   :  { %713 = vsyncadd [#allocation9], 4294965760 }
  0x1b   :  { %714 = dma.done.wait [#allocation12], 2048  }
  0x1c   :  { %715 = vsyncadd [#allocation12], 4294965248  ;;  %v502_v0 = vld [vmem:[#allocation5] sm:$0xff]  ;;  %v131_v1 = vld [vmem:[#allocation2] sm:$0xff]  ;;  %vm146_vm0 = vcmask 130048   ;;  %vm187_vm1 = vcmask 261120   ;;  %v350_v49 = vlaneseq }
  0x1d   :  { %v132_v2 = vld [vmem:[#allocation2 + $0x8] sm:$0xff]  ;;  %v504_v4 = vld [vmem:[#allocation7 + $0x8] sm:$0xff]  ;;  %157 = vmatpush.bf16.msra.mxu1 %v502_v0  ;;  %v503_v5 = vld [vmem:[#allocation7] sm:$0xff]  ;;  %vm260_vm2 = vcmask 785408   ;;  %s420_s27 = sshll.u32 %s858_s10, 4  ;;  %s421_s27 = int_to_ptr.hbm [resolvable:$true] %s420_s27 }
  0x1e   :  { %v133_v3 = vpack.c.bf16 %v132_v2, %v131_v1  ;;  %v510_v6 = vld [vmem:[#allocation8 + $0x28] sm:$0xff]  ;;  %v509_v7 = vld [vmem:[#allocation8 + $0x20] sm:$0xff]  ;;  %v528_v9 = vld [vmem:[%s850_s2] ss:$0 sm:$0xff]  ;;  %v351_v52 = vand.u32 127, %v350_v49 }
  0x1f   :  { %266 = vmatpush.bf16.msra.mxu2 %v510_v6  ;;  %v508_v16 = vld [vmem:[#allocation8 + $0x18] sm:$0xff]  ;;  %v507_v17 = vld [vmem:[#allocation8 + $0x10] sm:$0xff]  ;;  %v506_v18 = vld [vmem:[#allocation8 + $0x8] sm:$0xff] }
  0x20   :  { %440 = vmatmul.msk.bf16.vlgmr.msra.gmra.mxu1 %vm146_vm0, %v133_v3  ;;  %v505_v19 = vld [vmem:[#allocation8] sm:$0xff]  ;;  %v516_v20 = vld [vmem:[#allocation10 + $0x28] sm:$0xff]  ;;  %v515_v21 = vld [vmem:[#allocation10 + $0x20] sm:$0xff]  ;;  %vm352_vm3 = vcmp.lt.s32.totalorder %v351_v52, 24 }
  0x21   :  { %197 = vmatpush.bf16.msrb.mxu1 %v504_v4  ;;  %338 = vmatpush.bf16.msra.mxu3 %v516_v20  ;;  %v529_v23 = vld [vmem:[%s852_s4] ss:$0 sm:$0xff]  ;;  %v514_v30 = vld [vmem:[#allocation10 + $0x18] sm:$0xff]  ;;  %v513_v31 = vld [vmem:[#allocation10 + $0x10] sm:$0xff] }
  0x22   :  { %v512_v32 = vld [vmem:[#allocation10 + $0x8] sm:$0xff]  ;;  %v511_v33 = vld [vmem:[#allocation10] sm:$0xff]  ;;  %v380_v44 = vld [vmem:[#allocation11 + $0x68] sm:$0xff] }
  0x23   :  { %267 = vmatpush.bf16.msra.mxu2 %v509_v7  ;;  %v530_v35 = vld [vmem:[%s854_s6] ss:$0 sm:$0xff]  ;;  %v381_v43 = vld [vmem:[#allocation11 + $0x70] sm:$0xff]  ;;  %v379_v45 = vld [vmem:[#allocation11 + $0x60] sm:$0xff] }
  0x24   :  { %v382_v42 = vld [vmem:[#allocation11 + $0x78] sm:$0xff]  ;;  %v377_v47 = vld [vmem:[#allocation11 + $0x50] sm:$0xff]  ;;  %v376_v48 = vld [vmem:[#allocation11 + $0x48] sm:$0xff] }
  0x25   :  { %198 = vmatpush.bf16.msrb.mxu1 %v503_v5  ;;  %339 = vmatpush.bf16.msra.mxu3 %v515_v21  ;;  %v378_v46 = vld [vmem:[#allocation11 + $0x58] sm:$0xff]  ;;  %v375_v50 = vld [vmem:[#allocation11 + $0x40] sm:$0xff]  ;;  %v373_v53 = vld [vmem:[#allocation11 + $0x30] sm:$0xff] }
  0x26   :  { %383 = vmatpush.msra.mxu0 %v382_v42  ;;  %v374_v51 = vld [vmem:[#allocation11 + $0x38] sm:$0xff]  ;;  %v372_v61 = vld [vmem:[#allocation11 + $0x28] sm:$0xff]  ;;  %v371_v62 = vld [vmem:[#allocation11 + $0x20] sm:$0xff] }
  0x27   :  { %268 = vmatpush.bf16.msra.mxu2 %v508_v16  ;;  %v531_v54 = vld [vmem:[%s856_s8] ss:$0 sm:$0xff]  ;;  %v369_v0 = vld [vmem:[#allocation11 + $0x10] sm:$0xff]  ;;  %v368_v1 = vld [vmem:[#allocation11 + $0x8] sm:$0xff]  ;;  %s728_s8 = smov [#allocation13]  }
  0x28   :  { %384 = vmatpush.msra.mxu0 %v381_v43  ;;  %v370_v63 = vld [vmem:[#allocation11 + $0x18] sm:$0xff]  ;;  %v367_v2 = vld [vmem:[#allocation11] sm:$0xff]  ;;  %s418_s1 = sshll.u32 %s728_s8, 4  ;;  %s419_s1 = int_to_ptr.vmem [resolvable:$true] %s418_s1 }
  0x29   :  { %340 = vmatpush.bf16.msra.mxu3 %v514_v30 }
  0x2a   :  { %385 = vmatpush.msra.mxu0 %v380_v44 }
  0x2b   :  { %269 = vmatpush.bf16.msra.mxu2 %v507_v17 }
  0x2c   :  { %386 = vmatpush.msra.mxu0 %v379_v45 }
  0x2d   :  { %341 = vmatpush.bf16.msra.mxu3 %v513_v31 }
  0x2e   :  { %387 = vmatpush.msra.mxu0 %v378_v46 }
  0x2f   :  { %270 = vmatpush.bf16.msra.mxu2 %v506_v18 }
  0x30   :  { %388 = vmatpush.msra.mxu0 %v377_v47 }
  0x31   :  { %342 = vmatpush.bf16.msra.mxu3 %v512_v32 }
  0x32   :  { %389 = vmatpush.msra.mxu0 %v376_v48 }
  0x33   :  { %271 = vmatpush.bf16.msra.mxu2 %v505_v19 }
  0x34   :  { %390 = vmatpush.msra.mxu0 %v375_v50 }
  0x35   :  { %343 = vmatpush.bf16.msra.mxu3 %v511_v33 }
  0x36   :  { %391 = vmatpush.msra.mxu0 %v374_v51 }
  0x38   :  { %392 = vmatpush.msra.mxu0 %v373_v53 }
  0x3a   :  { %393 = vmatpush.msra.mxu0 %v372_v61 }
  0x3c   :  { %394 = vmatpush.msra.mxu0 %v371_v62 }
  0x3e   :  { %395 = vmatpush.msra.mxu0 %v370_v63 }
  0x40   :  { %396 = vmatpush.msra.mxu0 %v369_v0 }
  0x42   :  { %397 = vmatpush.msra.mxu0 %v368_v1 }
  0x44   :  { %398 = vmatpush.msra.mxu0 %v367_v2 }
  0x9d   :  { %v159_v8 = vpop.f32.mrf.mxu1 }
  0x9e   :  { %v160_v10 = vadd.f32 %v528_v9, %v159_v8 }
  0xa0   :  { %v164_v13 = vmax.f32 %v160_v10, 0.0 }
  0xa5   :  { %v161_v11 = vpop.f32.mrf.mxu1 }
  0xa6   :  { %v162_v12 = vadd.f32 %v528_v9, %v161_v11 }
  0xa8   :  { %v165_v14 = vmax.f32 %v162_v12, 0.0 }
  0xaa   :  { %v166_v15 = vpack.c.bf16 %v165_v14, %v164_v13 }
  0xac   :  { %449 = vmatmul.msk.bf16.vlgmr.msrb.gmra.mxu1 %vm187_vm1, %v166_v15 }
 0x129   :  { %v200_v22 = vpop.f32.mrf.mxu1 }
 0x12a   :  { %v201_v24 = vadd.f32 %v529_v23, %v200_v22 }
 0x12c   :  { %v205_v27 = vmax.f32 %v201_v24, 0.0 }
 0x131   :  { %v202_v25 = vpop.f32.mrf.mxu1 }
 0x132   :  { %v203_v26 = vadd.f32 %v529_v23, %v202_v25 }
 0x134   :  { %v206_v28 = vmax.f32 %v203_v26, 0.0 }
 0x136   :  { %v207_v29 = vpack.c.bf16 %v206_v28, %v205_v27 }
 0x138   :  { %474 = vmatmul.msk.bf16.vlgmr.msra.gmra.mxu2 %vm260_vm2, %v207_v29 }
 0x1bb   :  { %v273_v34 = vpop.f32.mrf.mxu2 }
 0x1bc   :  { %v274_v36 = vadd.f32 %v530_v35, %v273_v34 }
 0x1be   :  { %v278_v39 = vmax.f32 %v274_v36, 0.0 }
 0x1c3   :  { %v275_v37 = vpop.f32.mrf.mxu2 }
 0x1c4   :  { %v276_v38 = vadd.f32 %v530_v35, %v275_v37 }
 0x1c6   :  { %v279_v40 = vmax.f32 %v276_v38, 0.0 }
 0x1c8   :  { %v280_v41 = vpack.c.bf16 %v279_v40, %v278_v39 }
 0x1ca   :  { %499 = vmatmul.msk.bf16.vlgmr.msra.gmra.mxu3 %vm260_vm2, %v280_v41 }
 0x24d   :  { %v345_v55 = vpop.f32.mrf.mxu3 }
 0x24e   :  { %v346_v56 = vadd.f32 %v531_v54, %v345_v55 }
 0x250   :  { %v353_v57 = vsel %vm352_vm3, %v346_v56, -inf }
 0x251   :  { %355 = vmax.xlane.f32.xlu0 %v353_v57 }
 0x255   :  { %v347_v58 = vpop.f32.mrf.mxu3 }
 0x256   :  { %v348_v59 = vadd.f32 %v531_v54, %v347_v58 }
 0x258   :  { %v354_v60 = vsel %vm352_vm3, %v348_v59, -inf }
 0x259   :  { %357 = vmax.xlane.f32.xlu0 %v354_v60 }
 0x2c4   :  { %v356_v3 = vpop.xlane.xlu0 %355 }
 0x2c5   :  { %v359_v4 = vsub.f32 %v346_v56, %v356_v3 }
 0x2c7   :  { %v361_v5 = vmul.f32 1.442695, %v359_v4 }
 0x2c9   :  { %532 = vpow2.f32 %v361_v5 }
 0x2cc   :  { %v358_v6 = vpop.xlane.xlu0 %357 }
 0x2cd   :  { %v360_v7 = vsub.f32 %v348_v59, %v358_v6 }
 0x2cf   :  { %v533_v8 = vpop.eup %532  ;;  %v363_v9 = vmul.f32 1.442695, %v360_v7 }
 0x2d0   :  { %500 = vmatmul.msk.f32.vlgmr.msra.gmra.mxu0 %vm352_vm3, %v533_v8  ;;  %v365_v14 = vsel %vm352_vm3, %v533_v8, 0.0 }
 0x2d1   :  { %534 = vpow2.f32 %v363_v9 }
 0x2d7   :  { %v535_v10 = vpop.eup %534 }
 0x2d8   :  { %501 = vmatmul.msk.f32.gmra.mxu0 %vm352_vm3, %v535_v10  ;;  %v366_v19 = vsel %vm352_vm3, %v535_v10, 0.0 }
 0x34d   :  { %v400_v11 = vpop.f32.mrf.mxu0 }
 0x34e   :  { %v406_v12 = vsel %vm352_vm3, %v400_v11, 1.0 }
 0x34f   :  { %536 = vrcp.f32 %v406_v12 }
 0x355   :  { %v537_v13 = vpop.eup %536  ;;  %v403_v15 = vpop.f32.mrf.mxu0 }
 0x356   :  { %v407_v16 = vsel %vm352_vm3, %v403_v15, 1.0  ;;  %v410_v17 = vmul.f32 %v537_v13, %v365_v14 }
 0x357   :  { %538 = vrcp.f32 %v407_v16 }
 0x358   :  { %412 = vst [vmem:[#allocation13] sm:$0xff] %v410_v17 }
 0x35d   :  { %v539_v18 = vpop.eup %538 }
 0x35e   :  { %v411_v20 = vmul.f32 %v539_v18, %v366_v19 }
 0x360   :  { %413 = vst [vmem:[#allocation13 + $0x8] sm:$0xff] %v411_v20 }
 0x361   :  { %426 = dma.vmem_to_hbm [thread:$0]  %s419_s1, 256, %s421_s27, [#allocation4], %s723_s11, %s723_s11, %s724_s12  }
 0x362   :  { %716 = dma.done.wait [#allocation4], 256  }
 0x363   :  { %717 = vsyncadd [#allocation4], 4294967040 }
 0x364   :  { %431 = vsyncpa [#allocation3], 1 }
 0x365   :  { %432 = vsyncpa [#allocation6], 1 }
 0x366   :  { %433 = vsyncpa [#allocation9], 1 }
 0x367   :  { %434 = vsyncpa [#allocation12], 1 }
 0x368   :  { %435 = vsyncpa [#allocation4], 1 }

</bundles_post_ra>
